<compile_context>
chip_gen: v5e
topology: v5e:2x2
jax: 0.10.0
libtpu: 0.0.40
codegen_flags: <defaults>
</compile_context>

<pallas_src>
import functools

import jax
import jax.numpy as jnp
import numpy as np
from jax.experimental import pallas as pl
from jax.experimental.pallas import tpu as pltpu


def _label_smoothing_kernel(logits_ref, tgt_ref, out_ref, *,
                            smoothing, confidence, log_smooth, log_conf,
                            pad_col, ignore_index):
    # logits_ref: (TB, V) float block; tgt_ref: (TB, 1) int32 block;
    # out_ref: (1, 1) f32 SMEM partial sum for this block.
    logits = logits_ref[...].astype(jnp.float32)          # (TB, V)
    tb, v = logits.shape

    tgt = tgt_ref[...]                                     # (TB, 1) int32

    # log-sum-exp per row (numerically stable).
    m = jnp.max(logits, axis=-1, keepdims=True)            # (TB, 1)
    sum_exp = jnp.sum(jnp.exp(logits - m), axis=-1, keepdims=True)
    lse = m + jnp.log(sum_exp)                              # (TB, 1)

    # S = sum_j logp[j] = sum_j logits[j] - V * lse
    row_sum = jnp.sum(logits, axis=-1, keepdims=True)       # (TB, 1)
    s_logp = row_sum - np.float32(v) * lse                  # (TB, 1)

    # logp at the target column via masked gather + row reduce.
    col = jax.lax.broadcasted_iota(jnp.int32, (tb, v), 1)
    logits_tgt = jnp.sum(jnp.where(col == tgt, logits, 0.0),
                         axis=-1, keepdims=True)             # (TB, 1)
    logp_tgt = logits_tgt - lse

    # logp at the (static) padding column: narrow strided load from the ref.
    logp_pad = logits_ref[:, pad_col:pad_col + 1].astype(jnp.float32) - lse

    # If the target happens to land on the padding column (only possible with
    # a wrapped negative ignore_index), torch's scatter_ overrides the zero
    # with `confidence`, i.e. the smoothing set loses only one column.
    tgt_is_pad_col = (tgt == pad_col)
    n_smooth = jnp.where(tgt_is_pad_col,
                         np.float32(v - 1), np.float32(v - 2))
    pad_contrib = jnp.where(tgt_is_pad_col, 0.0, logp_pad)

    loss_row = smoothing * (n_smooth * log_smooth
                            - (s_logp - logp_tgt - pad_contrib))
    if confidence > 0.0:   # label_smoothing == 1.0 -> p[tgt] == 0, term drops
        loss_row = loss_row + confidence * (log_conf - logp_tgt)

    # Rows whose target is the padding index contribute nothing.
    loss_row = jnp.where(tgt == ignore_index, 0.0, loss_row)

    out_ref[0, 0] = jnp.sum(loss_row)


def label_smoothing_loss(output, target, *, label_smoothing, tgt_vocab_size,
                         ignore_index=-100,
                         vmem_block_bytes=8 * 1024 * 1024):
    """KL(label-smoothed targets || softmax(output)), summed. Matches the torch module."""
    assert 0.0 < label_smoothing <= 1.0
    B, V = output.shape
    assert V == tgt_vocab_size

    smoothing = label_smoothing / (tgt_vocab_size - 2)
    confidence = 1.0 - label_smoothing
    # torch's one_hot[self.padding_idx] wraps negative indices (e.g. -100).
    pad_col = ignore_index % tgt_vocab_size

    # Pick the largest row tile whose logits block fits the per-buffer budget
    # (the pipeline double-buffers it; intermediates take a similar amount).
    itemsize = jnp.dtype(output.dtype).itemsize
    rows_fit = max(8, (vmem_block_bytes // (V * itemsize)) // 8 * 8)
    if rows_fit >= B:
        block_b = B            # single block covering the whole batch
        b_pad = B
    else:
        block_b = int(rows_fit)             # multiple of 8 (sublane aligned)
        b_pad = -(-B // block_b) * block_b  # pad batch up to a whole block

    if b_pad != B:
        # Padded rows: zero logits + ignore_index target -> contribution is 0.
        output = jnp.pad(output, ((0, b_pad - B), (0, 0)))
        target = jnp.pad(target, (0, b_pad - B), constant_values=ignore_index)

    tgt2d = target.astype(jnp.int32).reshape(b_pad, 1)
    num_blocks = b_pad // block_b

    kernel = functools.partial(
        _label_smoothing_kernel,
        smoothing=np.float32(smoothing),
        confidence=float(confidence),
        log_smooth=np.float32(np.log(smoothing)),
        log_conf=np.float32(np.log(confidence)) if confidence > 0.0
        else np.float32(0.0),
        pad_col=int(pad_col),
        ignore_index=int(ignore_index),
    )

    # TODO(synk): target could be scalar-prefetched into SMEM instead of a
    # (block_b, 1) VMEM block; kept in VMEM for the vectorized lane compare.
    partials = pl.pallas_call(
        kernel,
        out_shape=jax.ShapeDtypeStruct((num_blocks, 1), jnp.float32),
        grid=(num_blocks,),
        in_specs=[
            pl.BlockSpec((block_b, V), lambda i: (i, 0)),
            pl.BlockSpec((block_b, 1), lambda i: (i, 0)),
        ],
        out_specs=pl.BlockSpec((1, 1), lambda i: (i, 0),
                               memory_space=pltpu.SMEM),
        compiler_params=pltpu.CompilerParams(
            dimension_semantics=("parallel",),
            vmem_limit_bytes=48 * 1024 * 1024),
    )(output, tgt2d)
    return jnp.sum(partials[:, 0])


def _reference_loss(output, target, *, label_smoothing, tgt_vocab_size,
                    ignore_index):
    logp = jax.nn.log_softmax(output.astype(jnp.float32), axis=-1)
    smoothing = label_smoothing / (tgt_vocab_size - 2)
    confidence = 1.0 - label_smoothing
    one_hot = jnp.full((tgt_vocab_size,), smoothing, jnp.float32)
    one_hot = one_hot.at[ignore_index].set(0.0)
    mp = jnp.tile(one_hot[None, :], (output.shape[0], 1))
    mp = mp.at[jnp.arange(output.shape[0]), target].set(confidence)
    mp = jnp.where((target == ignore_index)[:, None], 0.0, mp)
    safe = jnp.where(mp > 0, mp, 1.0)
    kl = jnp.where(mp > 0, mp * (jnp.log(safe) - logp), 0.0)
    return jnp.sum(kl)


if __name__ == "__main__":
    LABEL_SMOOTHING = 0.1
    key = jax.random.PRNGKey(0)
    k1, k2, k3, k4 = jax.random.split(key, 4)

    # --- Test 1: single-block path (block covers the whole batch). ---
    B, V, IGNORE = 16, 128, 3
    output = jax.random.normal(k1, (B, V), dtype=jnp.float32)
    target = jax.random.randint(k2, (B,), 0, V, dtype=jnp.int32)
    target = target.at[1].set(IGNORE).at[7].set(IGNORE)  # exercise ignore mask

    loss = label_smoothing_loss(
        output, target,
        label_smoothing=LABEL_SMOOTHING, tgt_vocab_size=V,
        ignore_index=IGNORE)
    loss = jax.block_until_ready(loss)
    ref = _reference_loss(
        output, target,
        label_smoothing=LABEL_SMOOTHING, tgt_vocab_size=V,
        ignore_index=IGNORE)
    np.testing.assert_allclose(np.asarray(loss), np.asarray(ref),
                               rtol=1e-5, atol=1e-4)

    # --- Test 2: multi-block path with a padded last block (B % block_b != 0). ---
    B2, V2, IGNORE2 = 23, 256, 0
    output2 = jax.random.normal(k3, (B2, V2), dtype=jnp.float32)
    target2 = jax.random.randint(k4, (B2,), 0, V2, dtype=jnp.int32)
    target2 = target2.at[5].set(IGNORE2)

    loss2 = label_smoothing_loss(
        output2, target2,
        label_smoothing=LABEL_SMOOTHING, tgt_vocab_size=V2,
        ignore_index=IGNORE2,
        vmem_block_bytes=8 * V2 * 4)   # force block_b=8 -> 3 blocks, 1 padded
    loss2 = jax.block_until_ready(loss2)
    ref2 = _reference_loss(
        output2, target2,
        label_smoothing=LABEL_SMOOTHING, tgt_vocab_size=V2,
        ignore_index=IGNORE2)
    np.testing.assert_allclose(np.asarray(loss2), np.asarray(ref2),
                               rtol=1e-5, atol=1e-4)

    print("KERNEL_OK")
</pallas_src>

<mosaic_0001>
module attributes {stable_mosaic.version = 11 : i64} {
  func.func @_label_smoothing_kernel(%arg0: i32, %arg1: memref<16x128xf32, #tpu.memory_space<vmem>>, %arg2: memref<16x1xi32, #tpu.memory_space<vmem>>, %arg3: memref<1x1xf32, #tpu.memory_space<smem>>) attributes {dimension_semantics = [#tpu.dimension_semantics<parallel>], iteration_bounds = array<i64: 1>, scalar_prefetch = 0 : i64, scratch_operands = 0 : i64, tpu.core_type = #tpu.core_type<tc>, window_params = [{transform_indices = @transform_0, window_bounds = array<i64: 16, 128>}, {transform_indices = @transform_1, window_bounds = array<i64: 16, 1>}, {transform_indices = @transform_2, window_bounds = array<i64: 1, 1>}]} {
    %c0 = arith.constant 0 : index
    %c0_0 = arith.constant 0 : index
    %0 = vector.load %arg1[%c0, %c0_0] : memref<16x128xf32, #tpu.memory_space<vmem>>, vector<16x128xf32>
    %c0_1 = arith.constant 0 : index
    %c0_2 = arith.constant 0 : index
    %1 = vector.load %arg2[%c0_1, %c0_2] : memref<16x1xi32, #tpu.memory_space<vmem>>, vector<16x1xi32>
    %cst = arith.constant dense<0xFF800000> : vector<16xf32>
    %2 = vector.multi_reduction <maximumf>, %0, %cst [1] : vector<16x128xf32> to vector<16xf32>
    %3 = vector.shape_cast %2 : vector<16xf32> to vector<16x1xf32>
    %4 = vector.broadcast %3 : vector<16x1xf32> to vector<16x128xf32>
    %5 = arith.subf %0, %4 : vector<16x128xf32>
    %6 = math.exp %5 : vector<16x128xf32>
    %cst_3 = arith.constant dense<0.000000e+00> : vector<16xf32>
    %7 = vector.multi_reduction <add>, %6, %cst_3 [1] : vector<16x128xf32> to vector<16xf32>
    %8 = vector.shape_cast %7 : vector<16xf32> to vector<16x1xf32>
    %9 = math.log %8 : vector<16x1xf32>
    %10 = arith.addf %3, %9 : vector<16x1xf32>
    %cst_4 = arith.constant dense<0.000000e+00> : vector<16xf32>
    %11 = vector.multi_reduction <add>, %0, %cst_4 [1] : vector<16x128xf32> to vector<16xf32>
    %12 = vector.shape_cast %11 : vector<16xf32> to vector<16x1xf32>
    %cst_5 = arith.constant 1.280000e+02 : f32
    %13 = vector.broadcast %cst_5 : f32 to vector<16x1xf32>
    %14 = arith.mulf %13, %10 : vector<16x1xf32>
    %15 = arith.subf %12, %14 : vector<16x1xf32>
    %16 = tpu.iota {dimensions = array<i32: 1>} : vector<16x128xi32>
    %17 = vector.broadcast %1 : vector<16x1xi32> to vector<16x128xi32>
    %18 = arith.cmpi eq, %16, %17 : vector<16x128xi32>
    %cst_6 = arith.constant 0.000000e+00 : f32
    %19 = vector.broadcast %cst_6 : f32 to vector<16x128xf32>
    %20 = arith.select %18, %0, %19 : vector<16x128xi1>, vector<16x128xf32>
    %cst_7 = arith.constant dense<0.000000e+00> : vector<16xf32>
    %21 = vector.multi_reduction <add>, %20, %cst_7 [1] : vector<16x128xf32> to vector<16xf32>
    %22 = vector.shape_cast %21 : vector<16xf32> to vector<16x1xf32>
    %23 = arith.subf %22, %10 : vector<16x1xf32>
    %c0_8 = arith.constant 0 : index
    %c3 = arith.constant 3 : index
    %24 = vector.load %arg1[%c0_8, %c3] : memref<16x128xf32, #tpu.memory_space<vmem>>, vector<16x1xf32>
    %25 = arith.subf %24, %10 : vector<16x1xf32>
    %c3_i32 = arith.constant 3 : i32
    %26 = vector.broadcast %c3_i32 : i32 to vector<16x1xi32>
    %27 = arith.cmpi eq, %1, %26 : vector<16x1xi32>
    %cst_9 = arith.constant 1.270000e+02 : f32
    %cst_10 = arith.constant 1.260000e+02 : f32
    %28 = vector.broadcast %cst_9 : f32 to vector<16x1xf32>
    %29 = vector.broadcast %cst_10 : f32 to vector<16x1xf32>
    %30 = arith.select %27, %28, %29 : vector<16x1xi1>, vector<16x1xf32>
    %cst_11 = arith.constant 0.000000e+00 : f32
    %31 = vector.broadcast %cst_11 : f32 to vector<16x1xf32>
    %32 = arith.select %27, %31, %25 : vector<16x1xi1>, vector<16x1xf32>
    %cst_12 = arith.constant -7.1388669 : f32
    %33 = vector.broadcast %cst_12 : f32 to vector<16x1xf32>
    %34 = arith.mulf %30, %33 : vector<16x1xf32>
    %35 = arith.subf %15, %23 : vector<16x1xf32>
    %36 = arith.subf %35, %32 : vector<16x1xf32>
    %37 = arith.subf %34, %36 : vector<16x1xf32>
    %cst_13 = arith.constant 7.93650805E-4 : f32
    %38 = vector.broadcast %cst_13 : f32 to vector<16x1xf32>
    %39 = arith.mulf %38, %37 : vector<16x1xf32>
    %cst_14 = arith.constant -0.105360515 : f32
    %40 = vector.broadcast %cst_14 : f32 to vector<16x1xf32>
    %41 = arith.subf %40, %23 : vector<16x1xf32>
    %cst_15 = arith.constant 0.899999976 : f32
    %42 = vector.broadcast %cst_15 : f32 to vector<16x1xf32>
    %43 = arith.mulf %42, %41 : vector<16x1xf32>
    %44 = arith.addf %39, %43 : vector<16x1xf32>
    %c3_i32_16 = arith.constant 3 : i32
    %45 = vector.broadcast %c3_i32_16 : i32 to vector<16x1xi32>
    %46 = arith.cmpi eq, %1, %45 : vector<16x1xi32>
    %cst_17 = arith.constant 0.000000e+00 : f32
    %47 = vector.broadcast %cst_17 : f32 to vector<16x1xf32>
    %48 = arith.select %46, %47, %44 : vector<16x1xi1>, vector<16x1xf32>
    %49 = vector.shape_cast %48 : vector<16x1xf32> to vector<1x16x1xf32>
    %cst_18 = arith.constant dense<0.000000e+00> : vector<1xf32>
    %50 = vector.multi_reduction <add>, %49, %cst_18 [1, 2] : vector<1x16x1xf32> to vector<1xf32>
    %51 = vector.shape_cast %50 : vector<1xf32> to vector<1x1x1xf32>
    %52 = vector.extract %51[0, 0, 0] : f32 from vector<1x1x1xf32>
    %c0_19 = arith.constant 0 : index
    %c0_20 = arith.constant 0 : index
    %53 = memref.load %arg3[%c0_19, %c0_20] : memref<1x1xf32, #tpu.memory_space<smem>>
    memref.store %52, %arg3[%c0_19, %c0_20] : memref<1x1xf32, #tpu.memory_space<smem>>
    return
  }
  func.func @transform_0(%arg0: i32) -> (i32, i32) {
    %c0_i32 = arith.constant 0 : i32
    %c0_i32_0 = arith.constant 0 : i32
    return %arg0, %c0_i32 : i32, i32
  }
  func.func @transform_1(%arg0: i32) -> (i32, i32) {
    %c0_i32 = arith.constant 0 : i32
    %c0_i32_0 = arith.constant 0 : i32
    return %arg0, %c0_i32 : i32, i32
  }
  func.func @transform_2(%arg0: i32) -> (i32, i32) {
    %c0_i32 = arith.constant 0 : i32
    %c0_i32_0 = arith.constant 0 : i32
    return %arg0, %c0_i32 : i32, i32
  }
}

</mosaic_0001>

<bundles_post_ra>
// kernel: tpu_custom_call.1
= control target key start
LH: loop header
LB: loop body
LE: loop exit
PB: predicated region body
PF: predicated region fallthrough
CT: control target
= control target key end

     0   :  { %v156_v2 = vmov 0   ;;  %s210_s0 = inlined_call_operand.vmem [shape: f32[16,128], index: 0, kind: input, shape index: {}]   ;;  %s211_s1 = inlined_call_operand.vmem [shape: s32[16,1], index: 1, kind: input, shape index: {}]   ;;  %s212_s2 = inlined_call_operand.hbm [shape: f32[1,1], index: 2, kind: output, shape index: {}]  }
   0x1   :  { %v12_v0 = vld [vmem:[%s210_s0] sm:$0xff]  ;;  %132 = vset.pattern.permute.xlu2 %v156_v2 }
   0x2   :  { %v181_v1 = vld [vmem:[%s211_s1] sm:$0xff]  ;;  %16 = vmax.xlane.f32.xlu0 %v12_v0 }
   0x3   :  { %7 = vsyncpa [#allocation3], 0  ;;  %47 = vperm.xlu2 %132, %v181_v1   ;;  %133 = vset.pattern.permute.xlu0 %v156_v2  ;;  %v13_v3 = vld [vmem:[%s210_s0 + $0x8] sm:$0xff]  ;;  %v44_v5 = vlaneseq  ;;  %s157_s0 = smov 125   ;;  %vm64_vm2 = vcmp.eq.s32.totalorder %v181_v1, 3  ;;  %v158_v34 = vmov 126.0  }
   0x4   :  { %v190_v4 = vld [vmem:[%s211_s1 + $0x8] sm:$0xff]  ;;  %v66_v35 = vsel %vm64_vm2, 127.0, %v158_v34  ;;  %vm96_vm4 = vcmask 7168   ;;  %s116_s18 = sshll.u32 %s212_s2, 4  ;;  %s159_s20 = smov [#allocation2]   ;;  %s117_s18 = int_to_ptr.hbm [resolvable:$true] %s116_s18 }
   0x5   :  { %v45_v7 = vand.u32 127, %v44_v5  ;;  %v78_v37 = vmul.f32 -7.138867, %v66_v35  ;;  %vm65_vm3 = vcmp.eq.s32.totalorder %v190_v4, 3 }
   0x6   :  { %v67_v47 = vsel %vm65_vm3, 127.0, %v158_v34 }
   0x7   :  { %v79_v52 = vmul.f32 -7.138867, %v67_v47 }
   0xa   :  { %18 = vmax.xlane.f32.xlu0 %v13_v3 }
   0xb   :  { %50 = vperm.xlu2 %132, %v190_v4  }
  0x12   :  { %36 = vadd.xlane.f32.xlu0 %v12_v0 }
  0x5d   :  { %v48_v6 = vpop.permute.xlu2 %47 }
  0x5e   :  { %vm52_vm0 = vcmp.eq.s32.totalorder %v45_v7, %v48_v6 }
  0x5f   :  { %v54_v8 = vsel %vm52_vm0, %v12_v0, 0.0 }
  0x60   :  { %56 = vadd.xlane.f32.xlu2 %v54_v8 }
  0x65   :  { %v51_v9 = vpop.permute.xlu2 %50 }
  0x66   :  { %vm53_vm1 = vcmp.eq.s32.totalorder %v45_v7, %v51_v9 }
  0x67   :  { %v55_v10 = vsel %vm53_vm1, %v13_v3, 0.0 }
  0x68   :  { %58 = vadd.xlane.f32.xlu0 %v55_v10 }
  0x75   :  { %v17_v11 = vpop.xlane.xlu0 %16 }
  0x76   :  { %v20_v12 = vsub.f32 %v12_v0, %v17_v11 }
  0x78   :  { %v22_v13 = vmul.f32 1.442695, %v20_v12 }
  0x7a   :  { %134 = vpow2.f32 %v22_v13 }
  0x7d   :  { %v19_v14 = vpop.xlane.xlu0 %18 }
  0x7e   :  { %v21_v15 = vsub.f32 %v13_v3, %v19_v14 }
  0x80   :  { %v135_v16 = vpop.eup %134  ;;  %v24_v17 = vmul.f32 1.442695, %v21_v15 }
  0x81   :  { %26 = vadd.xlane.f32.xlu1 %v135_v16 }
  0x82   :  { %136 = vpow2.f32 %v24_v17 }
  0x85   :  { %v37_v29 = vpop.xlane.xlu0 %36 }
  0x88   :  { %v137_v18 = vpop.eup %136 }
  0x89   :  { %28 = vadd.xlane.f32.xlu1 %v137_v18 }
  0x91   :  { %38 = vadd.xlane.f32.xlu1 %v13_v3 }
  0xd3   :  { %v57_v32 = vpop.xlane.xlu2 %56 }
  0xdb   :  { %v59_v39 = vpop.xlane.xlu0 %58 }
  0xf4   :  { %v27_v19 = vpop.xlane.xlu1 %26 }
  0xf5   :  { %138 = vlog2.f32 %v27_v19 }
  0xfb   :  { %v139_v20 = vpop.eup %138 }
  0xfc   :  { %v31_v21 = vmul.f32 0.6931472, %v139_v20  ;;  %v29_v22 = vpop.xlane.xlu1 %28 }
  0xfd   :  { %140 = vlog2.f32 %v29_v22 }
  0xfe   :  { %v34_v23 = vadd.f32 %v31_v21, %v17_v11 }
 0x100   :  { %v62_v24 = vsub.f32 %v12_v0, %v34_v23  ;;  %v40_v30 = vmul.f32 128.0, %v34_v23  ;;  %v60_v36 = vsub.f32 %v57_v32, %v34_v23 }
 0x102   :  { %70 = vrot.lane.b32.xlu1 %v62_v24, %s157_s0  ;;  %v42_v33 = vsub.f32 %v37_v29, %v40_v30  ;;  %v88_v43 = vsub.f32 -0.105360515, %v60_v36 }
 0x103   :  { %v141_v25 = vpop.eup %140 }
 0x104   :  { %v33_v26 = vmul.f32 0.6931472, %v141_v25  ;;  %v39_v31 = vpop.xlane.xlu1 %38  ;;  %v80_v38 = vsub.f32 %v42_v33, %v60_v36  ;;  %v90_v48 = vmul.f32 0.9, %v88_v43 }
 0x106   :  { %v35_v27 = vadd.f32 %v33_v26, %v19_v14 }
 0x108   :  { %v63_v28 = vsub.f32 %v13_v3, %v35_v27  ;;  %v41_v40 = vmul.f32 128.0, %v35_v27  ;;  %v61_v49 = vsub.f32 %v59_v39, %v35_v27 }
 0x10a   :  { %72 = vrot.lane.b32.xlu0 %v63_v28, %s157_s0  ;;  %v43_v45 = vsub.f32 %v39_v31, %v41_v40  ;;  %v89_v56 = vsub.f32 -0.105360515, %v61_v49 }
 0x10c   :  { %v81_v51 = vsub.f32 %v43_v45, %v61_v49  ;;  %v91_v60 = vmul.f32 0.9, %v89_v56 }
 0x174   :  { %v71_v41 = vpop.permute.xlu1 %70 }
 0x175   :  { %v76_v42 = vsel %vm64_vm2, 0.0, %v71_v41 }
 0x176   :  { %v82_v44 = vsub.f32 %v80_v38, %v76_v42 }
 0x178   :  { %v84_v46 = vsub.f32 %v78_v37, %v82_v44 }
 0x17a   :  { %v86_v50 = vmul.f32 0.0007936508, %v84_v46 }
 0x17c   :  { %v73_v53 = vpop.permute.xlu0 %72  ;;  %v92_v54 = vadd.f32 %v90_v48, %v86_v50 }
 0x17d   :  { %v77_v55 = vsel %vm65_vm3, 0.0, %v73_v53 }
 0x17e   :  { %v83_v57 = vsub.f32 %v81_v51, %v77_v55  ;;  %v94_v58 = vsel %vm64_vm2, 0.0, %v92_v54 }
 0x17f   :  { %v97_v0 = vsel %vm96_vm4, %v94_v58, 0.0 }
 0x180   :  { %v85_v59 = vsub.f32 %v79_v52, %v83_v57 }
 0x182   :  { %v87_v61 = vmul.f32 0.0007936508, %v85_v59 }
 0x184   :  { %v93_v62 = vadd.f32 %v91_v60, %v87_v61 }
 0x186   :  { %v95_v63 = vsel %vm65_vm3, 0.0, %v93_v62 }
 0x187   :  { %v98_v2 = vsel %vm96_vm4, %v95_v63, 0.0 }
 0x188   :  { %v99_v3 = vadd.f32 %v98_v2, %v97_v0 }
 0x18a   :  { %100 = vadd.xlane.f32.xlu1 %v99_v3 }
 0x1fd   :  { %v101_v5 = vpop.xlane.xlu1 %100 }
 0x1fe   :  { %v102_v6 = vrot.slane %v101_v5, 4 }
 0x200   :  { %v103_v7 = vadd.f32 %v102_v6, %v101_v5 }
 0x202   :  { %v104_v8 = vrot.slane %v103_v7, 2 }
 0x204   :  { %v105_v9 = vadd.f32 %v104_v8, %v103_v7 }
 0x206   :  { %v106_v10 = vrot.slane %v105_v9, 1 }
 0x208   :  { %v107_v1 = vadd.f32 %v106_v10, %v105_v9 }
 0x20a   :  { %126 = vpush %v107_v1 }
 0x23b   :  { %s127_s19 = spop %126 }
 0x23c   :  { %110 = sst [smem:[#allocation2]] %s127_s19 }
 0x23d   :  { %119 = dma.smem_to_hbm %s159_s20, 16, %s117_s18, [#allocation3]  }
 0x23e   :  { %154 = dma.done.wait [#allocation3], 16  }
 0x23f   :  { %155 = vsyncadd [#allocation3], 4294967280 }
 0x240   :  { %124 = sfence }
 0x241   :  { %125 = vsyncpa [#allocation3], 1 }

</bundles_post_ra>
